<compile_context>
chip_gen: v7x
topology: tpu7x:2x2x1
jax: 0.10.0
libtpu: 0.0.40
codegen_flags: <defaults>
</compile_context>

<pallas_src>
import functools

import jax
import jax.numpy as jnp
from jax.experimental import pallas as pl
from jax.experimental.pallas import tpu as pltpu

LANE = 128
SUBLANE = 8
TILE = SUBLANE * LANE  # 1024 elements = one f32 (8,128) vreg per stream


def _bce_from_logits(x, t):
    # Numerically stable BCE directly from logits:
    #   -log(sigmoid(x))     = softplus(-x) = softplus(x) - x
    #   -log(1 - sigmoid(x)) = softplus(x)
    # torch.binary_cross_entropy clamps each log term at -100 -> min(., 100).
    # NOTE: for logits > ~17 torch's f32 sigmoid saturates and its clamped log
    # already returns 100; this form stays ~x until x >= 100 (mathematically
    # more accurate, not bit-identical to torch in that saturated regime).
    sp = jnp.log1p(jnp.exp(-jnp.abs(x))) + jnp.maximum(x, 0.0)   # softplus(x)
    pos_term = jnp.minimum(sp - x, 100.0)
    neg_term = jnp.minimum(sp, 100.0)
    # blend form: saves one VALU op per vreg vs t*pos + (1-t)*neg
    return neg_term + t * (pos_term - neg_term)


def _focal_bce_kernel(x_ref, t_ref, part_ref, *,
                      num_blocks, block_rows, last_valid_rows):
    """Accumulates per-(sublane,lane) partial sums of the element-wise BCE."""
    p = pl.program_id(0)          # parallel (megacore) axis
    s = pl.program_id(1)          # arbitrary (reduction) axis
    steps = pl.num_programs(1)
    blk = p * steps + s           # logical block id

    @pl.when(s == 0)
    def _():
        part_ref[...] = jnp.zeros_like(part_ref)

    x = x_ref[...].astype(jnp.float32)
    t = t_ref[...].astype(jnp.float32)
    bce = _bce_from_logits(x, t)

    def accumulate(vals):
        # Per-lane/sublane partial sums: pure VPU adds under the DMA; the
        # single cross-lane/sublane reduce happens once, outside the hot loop.
        partial = jnp.sum(vals.reshape(block_rows // SUBLANE, SUBLANE, LANE),
                          axis=0)
        part_ref[...] += partial[None, :, :]

    if last_valid_rows == block_rows:
        # Block grid divides the prefix evenly: only the (rare) clamped
        # duplicate block from a ragged megacore split must be skipped.
        # One scalar compare per step, nothing per element.
        @pl.when(blk < num_blocks)
        def _():
            accumulate(bce)
    else:
        # rows % block_rows != 0: only the *last* logical block is ragged and
        # only it pays the (sublane-only) mask; every other block is maskless.
        @pl.when(blk < num_blocks - 1)
        def _():
            accumulate(bce)

        @pl.when(blk == num_blocks - 1)
        def _():
            row_ids = jax.lax.broadcasted_iota(jnp.int32, (block_rows, LANE), 0)
            accumulate(jnp.where(row_ids < last_valid_rows, bce, 0.0))


def _tpu_cores_per_chip():
    # Only v7x exposes 2 TensorCores that a "parallel" grid axis can shard
    # across; v5e/v6e run a leading grid axis as a serial loop (pure waste).
    try:
        kind = jax.devices()[0].device_kind.lower()
    except Exception:
        return 1
    return 2 if ("v7" in kind or "7x" in kind) else 1


def focal_loss(predictions, targets, alpha=0.8, gamma=2.0):
    """Pallas implementation of FocalLoss.forward (returns a scalar f32)."""
    n = predictions.size
    flat_x = predictions.reshape(-1)          # native dtype, free reshape
    flat_t = targets.reshape(-1)
    if flat_t.dtype == jnp.bool_:
        # TODO(synk): keep bool targets as int8 to shrink the stream 4x.
        flat_t = flat_t.astype(jnp.float32)

    n_main = (n // TILE) * TILE               # tile-aligned prefix -> kernel
    n_tail = n - n_main                       # < 1024 elements -> plain JAX

    bce_sum = jnp.float32(0.0)

    if n_main:
        if n_tail:
            # Only when n is not a multiple of 1024 (conv heads are aligned);
            # one prefix copy, no full-array pad, no per-element mask in-kernel.
            x_main, t_main = flat_x[:n_main], flat_t[:n_main]
        else:
            x_main, t_main = flat_x, flat_t   # zero-copy path (test case)

        rows = n_main // LANE                 # multiple of 8

        two_cores = _tpu_cores_per_chip() == 2
        max_block_rows = 8192 if two_cores else 4096   # 16 / 8 MiB dbl-buffered f32
        block_rows = min(max_block_rows, rows)          # multiple of 8
        num_blocks = pl.cdiv(rows, block_rows)
        last_valid_rows = rows - (num_blocks - 1) * block_rows

        n_par = 2 if (two_cores and num_blocks >= 2) else 1
        steps = pl.cdiv(num_blocks, n_par)

        def in_map(p, s):
            # Clamp so a ragged megacore split never issues an out-of-range
            # block DMA; the duplicate block is skipped by a scalar pl.when.
            return (jnp.minimum(p * steps + s, num_blocks - 1), 0)

        kernel = functools.partial(
            _focal_bce_kernel, num_blocks=num_blocks, block_rows=block_rows,
            last_valid_rows=last_valid_rows)

        partials = pl.pallas_call(
            kernel,
            out_shape=jax.ShapeDtypeStruct((n_par, SUBLANE, LANE), jnp.float32),
            grid_spec=pltpu.PrefetchScalarGridSpec(
                num_scalar_prefetch=0,
                grid=(n_par, steps),
                in_specs=[
                    pl.BlockSpec((block_rows, LANE), in_map),
                    pl.BlockSpec((block_rows, LANE), in_map),
                ],
                out_specs=pl.BlockSpec((1, SUBLANE, LANE), lambda p, s: (p, 0, 0)),
            ),
            compiler_params=pltpu.CompilerParams(
                dimension_semantics=("parallel", "arbitrary"),
                vmem_limit_bytes=32 * 1024 * 1024,
            ),
        )(x_main.reshape(rows, LANE), t_main.reshape(rows, LANE))

        bce_sum = bce_sum + jnp.sum(partials)

    if n_tail:
        xt = flat_x[n_main:].astype(jnp.float32)
        tt = flat_t[n_main:].astype(jnp.float32)
        bce_sum = bce_sum + jnp.sum(_bce_from_logits(xt, tt))

    # Tiny scalar epilogue.
    bce_mean = bce_sum / jnp.float32(n)                 # reduction='mean'
    one_minus = 1.0 - jnp.exp(-bce_mean)
    if gamma == 2:
        focal_factor = one_minus * one_minus            # avoid float pow for gamma=2
    else:
        focal_factor = one_minus ** gamma
    return alpha * focal_factor * bce_mean


def _reference_focal_loss(predictions, targets, alpha=0.8, gamma=2.0):
    # Torch-faithful reference: sigmoid -> BCE with log terms clamped at -100.
    p = jax.nn.sigmoid(predictions.reshape(-1).astype(jnp.float32))
    t = targets.reshape(-1).astype(jnp.float32)
    log_p = jnp.maximum(jnp.log(p), -100.0)
    log_1mp = jnp.maximum(jnp.log(1.0 - p), -100.0)
    bce = jnp.mean(-(t * log_p + (1.0 - t) * log_1mp))
    return alpha * (1.0 - jnp.exp(-bce)) ** gamma * bce


if __name__ == "__main__":
    key = jax.random.PRNGKey(0)
    k_pred, k_tgt = jax.random.split(key)

    # NCHW, as the PyTorch module would see from a conv head.
    predictions = jax.random.normal(k_pred, (2, 4, 16, 16), dtype=jnp.float32)
    targets = jax.random.bernoulli(k_tgt, p=0.3, shape=(2, 4, 16, 16)).astype(
        jnp.float32
    )

    loss = focal_loss(predictions, targets)
    jax.block_until_ready(loss)

    ref = _reference_focal_loss(predictions, targets)
    assert jnp.allclose(loss, ref, rtol=1e-5, atol=1e-6), (loss, ref)

    print("KERNEL_OK")
</pallas_src>

<mosaic_0001>
module attributes {stable_mosaic.version = 11 : i64} {
  func.func @_focal_bce_kernel(%arg0: i32, %arg1: i32, %arg2: memref<16x128xf32, #tpu.memory_space<vmem>>, %arg3: memref<16x128xf32, #tpu.memory_space<vmem>>, %arg4: memref<1x8x128xf32, #tpu.memory_space<vmem>>) attributes {dimension_semantics = [#tpu.dimension_semantics<parallel>, #tpu.dimension_semantics<arbitrary>], iteration_bounds = array<i64: 1, 1>, scalar_prefetch = 0 : i64, scratch_operands = 0 : i64, tpu.core_type = #tpu.core_type<tc>, window_params = [{transform_indices = @transform_0, window_bounds = array<i64: 16, 128>}, {transform_indices = @transform_1, window_bounds = array<i64: 16, 128>}, {transform_indices = @transform_2, window_bounds = array<i64: 1, 8, 128>}]} {
    %c1_i32 = arith.constant 1 : i32
    %0 = arith.muli %arg0, %c1_i32 : i32
    %1 = arith.addi %0, %arg1 : i32
    %c0_i32 = arith.constant 0 : i32
    %2 = arith.cmpi eq, %arg1, %c0_i32 : i32
    %3 = arith.extui %2 : i1 to i32
    %c0_i32_0 = arith.constant 0 : i32
    %4 = arith.cmpi ne, %3, %c0_i32_0 : i32
    scf.if %4 {
      %cst_9 = arith.constant 0.000000e+00 : f32
      %26 = vector.broadcast %cst_9 : f32 to vector<1x8x128xf32>
      %c0_10 = arith.constant 0 : index
      %c0_11 = arith.constant 0 : index
      %c0_12 = arith.constant 0 : index
      %27 = vector.load %arg4[%c0_10, %c0_11, %c0_12] : memref<1x8x128xf32, #tpu.memory_space<vmem>>, vector<1x8x128xf32>
      tpu.vector_store %arg4[%c0_10, %c0_11, %c0_12], %26 {strides = array<i32>} : memref<1x8x128xf32, #tpu.memory_space<vmem>>, vector<1x8x128xf32>,
    } else {
    }
    %c0 = arith.constant 0 : index
    %c0_1 = arith.constant 0 : index
    %5 = vector.load %arg2[%c0, %c0_1] : memref<16x128xf32, #tpu.memory_space<vmem>>, vector<16x128xf32>
    %c0_2 = arith.constant 0 : index
    %c0_3 = arith.constant 0 : index
    %6 = vector.load %arg3[%c0_2, %c0_3] : memref<16x128xf32, #tpu.memory_space<vmem>>, vector<16x128xf32>
    %7 = math.absf %5 : vector<16x128xf32>
    %cst = arith.constant 0.000000e+00 : f32
    %8 = vector.broadcast %cst : f32 to vector<16x128xf32>
    %9 = arith.subf %8, %7 : vector<16x128xf32>
    %10 = math.exp %9 : vector<16x128xf32>
    %11 = math.log1p %10 : vector<16x128xf32>
    %cst_4 = arith.constant 0.000000e+00 : f32
    %12 = vector.broadcast %cst_4 : f32 to vector<16x128xf32>
    %13 = arith.maximumf %5, %12 : vector<16x128xf32>
    %14 = arith.addf %11, %13 : vector<16x128xf32>
    %15 = arith.subf %14, %5 : vector<16x128xf32>
    %cst_5 = arith.constant 1.000000e+02 : f32
    %16 = vector.broadcast %cst_5 : f32 to vector<16x128xf32>
    %17 = arith.minimumf %15, %16 : vector<16x128xf32>
    %cst_6 = arith.constant 1.000000e+02 : f32
    %18 = vector.broadcast %cst_6 : f32 to vector<16x128xf32>
    %19 = arith.minimumf %14, %18 : vector<16x128xf32>
    %20 = arith.subf %17, %19 : vector<16x128xf32>
    %21 = arith.mulf %6, %20 : vector<16x128xf32>
    %22 = arith.addf %19, %21 : vector<16x128xf32>
    %c1_i32_7 = arith.constant 1 : i32
    %23 = arith.cmpi slt, %1, %c1_i32_7 : i32
    %24 = arith.extui %23 : i1 to i32
    %c0_i32_8 = arith.constant 0 : i32
    %25 = arith.cmpi ne, %24, %c0_i32_8 : i32
    scf.if %25 {
      %26 = vector.shape_cast %22 : vector<16x128xf32> to vector<2x8x128xf32>
      %cst_9 = arith.constant dense<0.000000e+00> : vector<8x128xf32>
      %27 = vector.multi_reduction <add>, %26, %cst_9 [0] : vector<2x8x128xf32> to vector<8x128xf32>
      %c0_10 = arith.constant 0 : index
      %c0_11 = arith.constant 0 : index
      %c0_12 = arith.constant 0 : index
      %28 = vector.load %arg4[%c0_10, %c0_11, %c0_12] : memref<1x8x128xf32, #tpu.memory_space<vmem>>, vector<1x8x128xf32>
      %29 = vector.shape_cast %27 : vector<8x128xf32> to vector<1x8x128xf32>
      %30 = arith.addf %28, %29 : vector<1x8x128xf32>
      %c0_13 = arith.constant 0 : index
      %c0_14 = arith.constant 0 : index
      %c0_15 = arith.constant 0 : index
      %31 = vector.load %arg4[%c0_13, %c0_14, %c0_15] : memref<1x8x128xf32, #tpu.memory_space<vmem>>, vector<1x8x128xf32>
      tpu.vector_store %arg4[%c0_13, %c0_14, %c0_15], %30 {strides = array<i32>} : memref<1x8x128xf32, #tpu.memory_space<vmem>>, vector<1x8x128xf32>,
    } else {
    }
    return
  }
  func.func @transform_0(%arg0: i32, %arg1: i32) -> (i32, i32) {
    %c1_i32 = arith.constant 1 : i32
    %0 = arith.muli %arg0, %c1_i32 : i32
    %1 = arith.addi %0, %arg1 : i32
    %c0_i32 = arith.constant 0 : i32
    %2 = arith.minsi %1, %c0_i32 : i32
    %c0_i32_0 = arith.constant 0 : i32
    %c0_i32_1 = arith.constant 0 : i32
    return %2, %c0_i32_0 : i32, i32
  }
  func.func @transform_1(%arg0: i32, %arg1: i32) -> (i32, i32) {
    %c1_i32 = arith.constant 1 : i32
    %0 = arith.muli %arg0, %c1_i32 : i32
    %1 = arith.addi %0, %arg1 : i32
    %c0_i32 = arith.constant 0 : i32
    %2 = arith.minsi %1, %c0_i32 : i32
    %c0_i32_0 = arith.constant 0 : i32
    %c0_i32_1 = arith.constant 0 : i32
    return %2, %c0_i32_0 : i32, i32
  }
  func.func @transform_2(%arg0: i32, %arg1: i32) -> (i32, i32, i32) {
    %c0_i32 = arith.constant 0 : i32
    %c0_i32_0 = arith.constant 0 : i32
    %c0_i32_1 = arith.constant 0 : i32
    return %arg0, %c0_i32, %c0_i32_0 : i32, i32, i32
  }
}

</mosaic_0001>

<bundles_post_ra>
// kernel: tpu_custom_call.1
= control target key start
LH: loop header
LB: loop body
LE: loop exit
PB: predicated region body
PF: predicated region fallthrough
CT: control target
= control target key end

     0   :  { %7 = vsyncpa [#allocation3], 0  ;;  %s282_s0 = inlined_call_operand.hbm [shape: f32[16,128], index: 0, kind: input, shape index: {}]   ;;  %s283_s1 = inlined_call_operand.hbm [shape: f32[16,128], index: 1, kind: input, shape index: {}]   ;;  %s284_s2 = inlined_call_operand.hbm [shape: f32[1,8,128], index: 2, kind: output, shape index: {}]  }
   0x1   :  { %8 = vsyncpa [#allocation6], 0 }
   0x2   :  { %9 = vsyncpa [#allocation4], 0  ;;  %s226_s9 = smov [#allocation2]   ;;  %s154_s13 = scalar_lea.hbm %s282_s0, 256 }
   0x3   :  { %s21_s10 = sshll.u32 %s226_s9, 4  ;;  %p155_p0 = scmp.ne.s32.totalorder %s282_s0, %s154_s13  ;;  %s22_s10 = int_to_ptr.vmem [resolvable:$true] %s21_s10 }
   0x4   :  { %p158_p1 = scmp.lt.u32.totalorder %s154_s13, %s282_s0 }
   0x6   :  { %p160_p2 = pnand %p158_p1, %p155_p0 }
   0x8   :  { %163 = shalt.err (!%p160_p2)
}
   0x9   :  { %s164_s18 = scalar_lea.vmem %s22_s10, 256  ;;  %p169_p4 = scmp.lt.s32.totalorder %s22_s10, %s22_s10 }
   0xa   :  { %p165_p3 = scmp.ne.s32.totalorder %s22_s10, %s164_s18  ;;  %p170_p5 = scmp.lt.s32.totalorder %s164_s18, %s164_s18 }
   0xc   :  { %p171_p6 = por %p170_p5, %p169_p4 }
   0xe   :  { %p172_p7 = pnand %p171_p6, %p165_p3 }
  0x10   :  { %175 = shalt.err (!%p172_p7)
}
  0x11   :  { %s227_s19 = smov 128   ;;  %s228_s20 = smov 8  }
  0x12   :  { %27 = dma.hbm_to_vmem [thread:$0]  %s282_s0, 256, %s22_s10, [#allocation3], %s227_s19, %s227_s19, %s228_s20  }
  0x13   :  { %s229_s23 = smov [#allocation5]   ;;  %s176_s27 = scalar_lea.hbm %s283_s1, 256 }
  0x14   :  { %s39_s24 = sshll.u32 %s229_s23, 4  ;;  %p177_p8 = scmp.ne.s32.totalorder %s283_s1, %s176_s27  ;;  %s40_s24 = int_to_ptr.vmem [resolvable:$true] %s39_s24 }
  0x15   :  { %p180_p9 = scmp.lt.u32.totalorder %s176_s27, %s283_s1 }
  0x17   :  { %p182_p10 = pnand %p180_p9, %p177_p8 }
  0x19   :  { %185 = shalt.err (!%p182_p10)
}
  0x1a   :  { %s186_s4 = scalar_lea.vmem %s40_s24, 256  ;;  %p191_p12 = scmp.lt.s32.totalorder %s40_s24, %s40_s24 }
  0x1b   :  { %p187_p11 = scmp.ne.s32.totalorder %s40_s24, %s186_s4  ;;  %p192_p13 = scmp.lt.s32.totalorder %s186_s4, %s186_s4 }
  0x1d   :  { %p193_p0 = por %p192_p13, %p191_p12 }
  0x1f   :  { %p194_p1 = pnand %p193_p0, %p187_p11 }
  0x21   :  { %197 = shalt.err (!%p194_p1)
}
  0x22   :  { %45 = dma.hbm_to_vmem [thread:$0]  %s283_s1, 256, %s40_s24, [#allocation6], %s227_s19, %s227_s19, %s228_s20  }
  0x23   :  { %220 = dma.done.wait [#allocation3], 256  }
  0x24   :  { %221 = vsyncadd [#allocation3], 4294967040 }
  0x25   :  { %222 = dma.done.wait [#allocation6], 256  }
  0x26   :  { %223 = vsyncadd [#allocation6], 4294967040  ;;  %v66_v0 = vld [vmem:[#allocation2] sm:$0xff]  ;;  %v67_v1 = vld [vmem:[#allocation2 + $0x8] sm:$0xff]  ;;  %s230_s1 = smov [#allocation7]  }
  0x27   :  { %v70_v2 = vand.u32 2147483647, %v66_v0  ;;  %v71_v3 = vand.u32 2147483647, %v67_v1  ;;  %v96_v21 = vmax.f32 %v66_v0, 0.0  ;;  %v97_v24 = vmax.f32 %v67_v1, 0.0 }
  0x28   :  { %v68_v35 = vld [vmem:[#allocation5] sm:$0xff]  ;;  %v69_v37 = vld [vmem:[#allocation5 + $0x8] sm:$0xff]  ;;  %s126_s6 = sshll.u32 %s230_s1, 4  ;;  %s127_s6 = int_to_ptr.vmem [resolvable:$true] %s126_s6 }
  0x29   :  { %v72_v4 = vsub.f32 0.0, %v70_v2  ;;  %v73_v5 = vsub.f32 0.0, %v71_v3  ;;  %s198_s7 = scalar_lea.vmem %s127_s6, 128  ;;  %p203_p3 = scmp.lt.s32.totalorder %s127_s6, %s127_s6 }
  0x2a   :  { %p199_p2 = scmp.ne.s32.totalorder %s127_s6, %s198_s7  ;;  %p204_p4 = scmp.lt.s32.totalorder %s198_s7, %s198_s7 }
  0x2b   :  { %v74_v6 = vmul.f32 1.442695, %v72_v4  ;;  %v76_v7 = vmul.f32 1.442695, %v73_v5 }
  0x2c   :  { %p205_p5 = por %p204_p4, %p203_p3 }
  0x2d   :  { %146 = vpow2.f32 %v74_v6 }
  0x2e   :  { %148 = vpow2.f32 %v76_v7  ;;  %p206_p6 = pnand %p205_p5, %p199_p2 }
  0x37   :  { %v147_v8 = vpop.eup %146 }
  0x38   :  { %v149_v9 = vpop.eup %148  ;;  %v78_v10 = vadd.f32 1.0, %v147_v8  ;;  %v81_v12 = vmul.f32 -0.5, %v147_v8  ;;  %v84_v15 = vand.u32 2147483647, %v147_v8 }
  0x39   :  { %v87_v11 = vadd.f32 1.0, %v149_v9  ;;  %v90_v13 = vmul.f32 -0.5, %v149_v9  ;;  %v93_v17 = vand.u32 2147483647, %v149_v9 }
  0x3a   :  { %150 = vlog2.f32 %v78_v10  ;;  %v82_v14 = vadd.f32 1.0, %v81_v12  ;;  %vm85_vm0 = vcmp.lt.f32.partialorder %v84_v15, 0.0004427343 }
  0x3b   :  { %152 = vlog2.f32 %v87_v11  ;;  %v91_v16 = vadd.f32 1.0, %v90_v13  ;;  %vm94_vm1 = vcmp.lt.f32.partialorder %v93_v17, 0.0004427343 }
  0x3c   :  { %v83_v18 = vmul.f32 %v147_v8, %v82_v14 }
  0x3d   :  { %v92_v20 = vmul.f32 %v149_v9, %v91_v16 }
  0x44   :  { %v151_v19 = vpop.eup %150 }
  0x45   :  { %v153_v22 = vpop.eup %152  ;;  %v80_v23 = vmul.f32 0.6931472, %v151_v19 }
  0x46   :  { %v89_v25 = vmul.f32 0.6931472, %v153_v22 }
  0x47   :  { %v86_v26 = vsel %vm85_vm0, %v83_v18, %v80_v23 }
  0x48   :  { %v95_v27 = vsel %vm94_vm1, %v92_v20, %v89_v25  ;;  %v98_v28 = vadd.f32 %v96_v21, %v86_v26 }
  0x49   :  { %v99_v29 = vadd.f32 %v97_v24, %v95_v27 }
  0x4a   :  { %v100_v30 = vsub.f32 %v98_v28, %v66_v0  ;;  %v104_v31 = vmin.f32 %v98_v28, 100.0 }
  0x4b   :  { %v101_v32 = vsub.f32 %v99_v29, %v67_v1  ;;  %v105_v33 = vmin.f32 %v99_v29, 100.0 }
  0x4c   :  { %v102_v34 = vmin.f32 %v100_v30, 100.0 }
  0x4d   :  { %v103_v36 = vmin.f32 %v101_v32, 100.0 }
  0x4e   :  { %v106_v38 = vsub.f32 %v102_v34, %v104_v31 }
  0x4f   :  { %v107_v39 = vsub.f32 %v103_v36, %v105_v33 }
  0x50   :  { %v108_v40 = vmul.f32 %v106_v38, %v68_v35 }
  0x51   :  { %v109_v41 = vmul.f32 %v107_v39, %v69_v37 }
  0x52   :  { %v110_v42 = vadd.f32 %v108_v40, %v104_v31 }
  0x53   :  { %v111_v43 = vadd.f32 %v109_v41, %v105_v33 }
  0x55   :  { %v116_v44 = vadd.f32 %v111_v43, %v110_v42 }
  0x57   :  { %119 = vst [vmem:[#allocation7] sm:$0xff] %v116_v44 }
  0x58   :  { %209 = shalt.err (!%p206_p6)
}
  0x59   :  { %s210_s10 = scalar_lea.hbm %s284_s2, 128 }
  0x5a   :  { %p211_p7 = scmp.ne.s32.totalorder %s284_s2, %s210_s10  ;;  %p214_p8 = scmp.lt.u32.totalorder %s210_s10, %s284_s2 }
  0x5c   :  { %p216_p9 = pnand %p214_p8, %p211_p7 }
  0x5e   :  { %219 = shalt.err (!%p216_p9)
}
  0x5f   :  { %129 = dma.vmem_to_hbm [thread:$0]  %s127_s6, 128, %s284_s2, [#allocation4]  }
  0x60   :  { %224 = dma.done.wait [#allocation4], 128  }
  0x61   :  { %225 = vsyncadd [#allocation4], 4294967168 }
  0x62   :  { %133 = vsyncpa [#allocation3], 1 }
  0x63   :  { %134 = vsyncpa [#allocation6], 1 }
  0x64   :  { %135 = vsyncpa [#allocation4], 1 }

</bundles_post_ra>
